<compile_context>
chip_gen: v7x
topology: tpu7x:2x2x1
jax: 0.10.0
libtpu: 0.0.40
codegen_flags: <defaults>
</compile_context>

<pallas_src>
import jax
import jax.numpy as jnp
from jax.experimental import pallas as pl
from jax.experimental.pallas import tpu as pltpu


def _calibrator_kernel(xt_ref, a_ref, b_ref, o_ref):
    # xt_ref: [C, TB]  (classes x batch-tile), a_ref/b_ref: [C, 1], o_ref: [C, TB]
    x = xt_ref[...]
    a = a_ref[...]
    b = b_ref[...]
    # Compute in f32 (mandatory on v5e: no bf16 VPU/EUP). No-op for f32 inputs.
    if x.dtype != jnp.float32:
        x = x.astype(jnp.float32)
    if a.dtype != jnp.float32:
        a = a.astype(jnp.float32)
    if b.dtype != jnp.float32:
        b = b.astype(jnp.float32)

    y = jax.nn.sigmoid(a * x + b)                 # VPU affine + EUP sigmoid
    denom = jnp.sum(y, axis=0, keepdims=True)     # per-sample (sublane) sum -> [1, TB]
    # Exact reciprocal keeps 1e-5 tolerance; kernel is mem-bound so this is free.
    o_ref[...] = (y * pl.reciprocal(denom, approx=False)).astype(o_ref.dtype)


def _pick_batch_tile(n, c, target_tile_bytes=2 * 1024 * 1024):
    """Largest lane-tile that is a multiple of 128 and ~target_tile_bytes,
    falling back to the full batch when it is small (full-dim blocks are legal)."""
    if n <= 128:
        return n
    tb = max(128, (target_tile_bytes // (c * 4)) // 128 * 128)
    if tb >= n:
        return n
    return tb


def calibrator_forward(x, a, b, *, batch_tile=None):
    """x: [N, C]; a, b: [C]  ->  [N, C], rows sum to 1."""
    n, c = x.shape
    xt = x.T                        # [C, N]: batch on the lane axis (lane-dense)
    a2 = a.reshape(c, 1)
    b2 = b.reshape(c, 1)

    tb = batch_tile if batch_tile is not None else _pick_batch_tile(n, c)
    grid = (pl.cdiv(n, tb),)

    out_t = pl.pallas_call(
        _calibrator_kernel,
        out_shape=jax.ShapeDtypeStruct((c, n), x.dtype),
        grid=grid,
        in_specs=[
            pl.BlockSpec((c, tb), lambda i: (0, i)),   # x^T tile, streamed over batch
            pl.BlockSpec((c, 1), lambda i: (0, 0)),    # a  (resident, same block each step)
            pl.BlockSpec((c, 1), lambda i: (0, 0)),    # b
        ],
        out_specs=pl.BlockSpec((c, tb), lambda i: (0, i)),
        compiler_params=pltpu.CompilerParams(
            dimension_semantics=("parallel",),         # shard batch tiles across TCs (v7x)
        ),
        cost_estimate=pl.CostEstimate(
            flops=4 * n * c,                           # affine + sum + normalize
            transcendentals=n * c,                     # sigmoid
            bytes_accessed=2 * n * c * 4 + 2 * c * 4,
        ),
    )(xt, a2, b2)
    return out_t.T


def calibrator_reference(x, a, b):
    y = jax.nn.sigmoid(a[None, :] * x + b[None, :])
    return y / jnp.sum(y, axis=1, keepdims=True)


if __name__ == "__main__":
    key = jax.random.PRNGKey(0)
    k_x, k_a, k_b, k_x2 = jax.random.split(key, 4)

    batch = 8
    num_classes = 8  # input_size == output_size == predict_proba column count

    # Deterministic parameter init mirroring nn.init.normal_(std=0.1)
    a = 0.1 * jax.random.normal(k_a, (num_classes,), dtype=jnp.float32)
    b = 0.1 * jax.random.normal(k_b, (num_classes,), dtype=jnp.float32)

    # Synthetic "predicted probabilities" input
    logits = jax.random.normal(k_x, (batch, num_classes), dtype=jnp.float32)
    x = jax.nn.softmax(logits, axis=1)

    out = jax.block_until_ready(calibrator_forward(x, a, b))
    ref = calibrator_reference(x, a, b)
    assert out.shape == (batch, num_classes)
    assert jnp.allclose(out, ref, atol=1e-5, rtol=1e-5)
    assert jnp.allclose(jnp.sum(out, axis=1), jnp.ones((batch,)), atol=1e-5)

    # Exercise the tiled (grid > 1, partial last block) path as well.
    batch2 = 300
    logits2 = jax.random.normal(k_x2, (batch2, num_classes), dtype=jnp.float32)
    x2 = jax.nn.softmax(logits2, axis=1)
    out2 = jax.block_until_ready(calibrator_forward(x2, a, b, batch_tile=128))
    ref2 = calibrator_reference(x2, a, b)
    assert out2.shape == (batch2, num_classes)
    assert jnp.allclose(out2, ref2, atol=1e-5, rtol=1e-5)
    assert jnp.allclose(jnp.sum(out2, axis=1), jnp.ones((batch2,)), atol=1e-5)

    print("KERNEL_OK")
</pallas_src>

<mosaic_0001>
module attributes {stable_mosaic.version = 11 : i64} {
  func.func @_calibrator_kernel(%arg0: i32, %arg1: memref<8x8xf32, #tpu.memory_space<vmem>>, %arg2: memref<8x1xf32, #tpu.memory_space<vmem>>, %arg3: memref<8x1xf32, #tpu.memory_space<vmem>>, %arg4: memref<8x8xf32, #tpu.memory_space<vmem>>) attributes {dimension_semantics = [#tpu.dimension_semantics<parallel>], iteration_bounds = array<i64: 1>, scalar_prefetch = 0 : i64, scratch_operands = 0 : i64, tpu.core_type = #tpu.core_type<tc>, window_params = [{transform_indices = @transform_0, window_bounds = array<i64: 8, 8>}, {pipeline_mode = #tpu.pipeline_mode<synchronous>, transform_indices = @transform_1, window_bounds = array<i64: 8, 1>}, {pipeline_mode = #tpu.pipeline_mode<synchronous>, transform_indices = @transform_2, window_bounds = array<i64: 8, 1>}, {transform_indices = @transform_3, window_bounds = array<i64: 8, 8>}]} {
    %c0 = arith.constant 0 : index
    %c0_0 = arith.constant 0 : index
    %0 = vector.load %arg1[%c0, %c0_0] : memref<8x8xf32, #tpu.memory_space<vmem>>, vector<8x8xf32>
    %c0_1 = arith.constant 0 : index
    %c0_2 = arith.constant 0 : index
    %1 = vector.load %arg2[%c0_1, %c0_2] : memref<8x1xf32, #tpu.memory_space<vmem>>, vector<8x1xf32>
    %c0_3 = arith.constant 0 : index
    %c0_4 = arith.constant 0 : index
    %2 = vector.load %arg3[%c0_3, %c0_4] : memref<8x1xf32, #tpu.memory_space<vmem>>, vector<8x1xf32>
    %3 = vector.broadcast %1 : vector<8x1xf32> to vector<8x8xf32>
    %4 = arith.mulf %3, %0 : vector<8x8xf32>
    %5 = vector.broadcast %2 : vector<8x1xf32> to vector<8x8xf32>
    %6 = arith.addf %4, %5 : vector<8x8xf32>
    %7 = arith.negf %6 : vector<8x8xf32>
    %8 = math.exp %7 : vector<8x8xf32>
    %cst = arith.constant 1.000000e+00 : f32
    %9 = vector.broadcast %cst : f32 to vector<8x8xf32>
    %10 = arith.addf %9, %8 : vector<8x8xf32>
    %11 = arith.divf %9, %10 : vector<8x8xf32>
    %cst_5 = arith.constant dense<0.000000e+00> : vector<8xf32>
    %12 = vector.multi_reduction <add>, %11, %cst_5 [0] : vector<8x8xf32> to vector<8xf32>
    %13 = vector.shape_cast %12 : vector<8xf32> to vector<1x8xf32>
    %14 = tpu.reciprocal %13 : vector<1x8xf32> -> vector<1x8xf32>
    %15 = vector.broadcast %14 : vector<1x8xf32> to vector<8x8xf32>
    %16 = arith.mulf %11, %15 : vector<8x8xf32>
    %c0_6 = arith.constant 0 : index
    %c0_7 = arith.constant 0 : index
    %17 = vector.load %arg4[%c0_6, %c0_7] : memref<8x8xf32, #tpu.memory_space<vmem>>, vector<8x8xf32>
    tpu.vector_store %arg4[%c0_6, %c0_7], %16 {strides = array<i32>} : memref<8x8xf32, #tpu.memory_space<vmem>>, vector<8x8xf32>,
    return
  }
  func.func @transform_0(%arg0: i32) -> (i32, i32) {
    %c0_i32 = arith.constant 0 : i32
    %c0_i32_0 = arith.constant 0 : i32
    return %c0_i32, %arg0 : i32, i32
  }
  func.func @transform_1(%arg0: i32) -> (i32, i32) {
    %c0_i32 = arith.constant 0 : i32
    %c0_i32_0 = arith.constant 0 : i32
    %c0_i32_1 = arith.constant 0 : i32
    return %c0_i32, %c0_i32_0 : i32, i32
  }
  func.func @transform_2(%arg0: i32) -> (i32, i32) {
    %c0_i32 = arith.constant 0 : i32
    %c0_i32_0 = arith.constant 0 : i32
    %c0_i32_1 = arith.constant 0 : i32
    return %c0_i32, %c0_i32_0 : i32, i32
  }
  func.func @transform_3(%arg0: i32) -> (i32, i32) {
    %c0_i32 = arith.constant 0 : i32
    %c0_i32_0 = arith.constant 0 : i32
    return %c0_i32, %arg0 : i32, i32
  }
}

</mosaic_0001>

<bundles_post_ra>
// kernel: tpu_custom_call.1
= control target key start
LH: loop header
LB: loop body
LE: loop exit
PB: predicated region body
PF: predicated region fallthrough
CT: control target
= control target key end

     0   :  { %s138_s0 = inlined_call_operand.vmem [shape: f32[8,8], index: 0, kind: input, shape index: {}]   ;;  %s139_s1 = inlined_call_operand.vmem [shape: f32[8,1], index: 1, kind: input, shape index: {}]   ;;  %s140_s2 = inlined_call_operand.vmem [shape: f32[8,1], index: 2, kind: input, shape index: {}]   ;;  %s141_s3 = inlined_call_operand.hbm [shape: f32[8,8], index: 3, kind: output, shape index: {}]  }
   0x1   :  { %v16_v0 = vld [vmem:[%s139_s1] sm:$0xff] }
   0x2   :  { %8 = vsyncpa [#allocation3], 0  ;;  %v95_v1 = vmov 0   ;;  %v17_v2 = vld [vmem:[%s140_s2] sm:$0xff]  ;;  %vm36_vm0 = vcmask 64512   ;;  %s96_s1 = smov [#allocation2]  }
   0x3   :  { %64 = vset.pattern.permute.xlu0 %v95_v1  ;;  %v15_v4 = vld [vmem:[%s138_s0] sm:$0xff]  ;;  %s53_s0 = sshll.u32 %s96_s1, 4  ;;  %s54_s0 = int_to_ptr.vmem [resolvable:$true] %s53_s0 }
   0x4   :  { %20 = vperm.xlu0 %64, %v16_v0   ;;  %s71_s2 = scalar_lea.vmem %s54_s0, 128  ;;  %p76_p1 = scmp.lt.s32.totalorder %s54_s0, %s54_s0 }
   0x5   :  { %p72_p0 = scmp.ne.s32.totalorder %s54_s0, %s71_s2  ;;  %p77_p2 = scmp.lt.s32.totalorder %s71_s2, %s71_s2 }
   0x7   :  { %p78_p3 = por %p77_p2, %p76_p1 }
   0x8   :  { %26 = vperm.xlu0 %64, %v17_v2  }
   0x9   :  { %p79_p4 = pnand %p78_p3, %p72_p0 }
  0x83   :  { %v21_v3 = vpop.permute.xlu0 %20 }
  0x84   :  { %v23_v5 = vmul.f32 %v21_v3, %v15_v4 }
  0x87   :  { %v27_v6 = vpop.permute.xlu0 %26 }
  0x88   :  { %v29_v7 = vadd.f32 %v27_v6, %v23_v5 }
  0x8a   :  { %v61_v8 = vmul.f32 -1.442695, %v29_v7 }
  0x8c   :  { %65 = vpow2.f32 %v61_v8 }
  0x96   :  { %v66_v9 = vpop.eup %65 }
  0x97   :  { %v33_v10 = vadd.f32 1.0, %v66_v9 }
  0x99   :  { %67 = vrcp.f32 %v33_v10 }
  0xa3   :  { %v68_v11 = vpop.eup %67 }
  0xa4   :  { %v37_v12 = vsel %vm36_vm0, %v68_v11, 0.0 }
  0xa5   :  { %v38_v13 = vrot.slane %v37_v12, 4 }
  0xa7   :  { %v39_v14 = vadd.f32 %v38_v13, %v37_v12 }
  0xa9   :  { %v40_v15 = vrot.slane %v39_v14, 2 }
  0xab   :  { %v41_v16 = vadd.f32 %v40_v15, %v39_v14 }
  0xad   :  { %v42_v17 = vrot.slane %v41_v16, 1 }
  0xaf   :  { %v43_v18 = vadd.f32 %v42_v17, %v41_v16 }
  0xb1   :  { %69 = vrcp.f32 %v43_v18 }
  0xbb   :  { %v70_v19 = vpop.eup %69 }
  0xbc   :  { %v45_v20 = vmul.f32 %v70_v19, %v68_v11 }
  0xbe   :  { %46 = vst.msk [vmem:[#allocation2] sm:$0xff] %vm36_vm0, %v45_v20 }
  0xbf   :  { %82 = shalt.err (!%p79_p4)
}
  0xc0   :  { %s83_s20 = scalar_lea.hbm %s141_s3, 128 }
  0xc1   :  { %p84_p5 = scmp.ne.s32.totalorder %s141_s3, %s83_s20  ;;  %p87_p6 = scmp.lt.u32.totalorder %s83_s20, %s141_s3 }
  0xc3   :  { %p89_p7 = pnand %p87_p6, %p84_p5 }
  0xc5   :  { %92 = shalt.err (!%p89_p7)
}
  0xc6   :  { %56 = dma.vmem_to_hbm [thread:$0]  %s54_s0, 128, %s141_s3, [#allocation3]  }
  0xc7   :  { %93 = dma.done.wait [#allocation3], 128  }
  0xc8   :  { %94 = vsyncadd [#allocation3], 4294967168 }
  0xc9   :  { %60 = vsyncpa [#allocation3], 1 }

</bundles_post_ra>
